<compile_context>
chip_gen: v5e
topology: v5e:2x2
jax: 0.10.0
libtpu: 0.0.40
codegen_flags: <defaults>
</compile_context>

<pallas_src>
import functools

import jax
import jax.numpy as jnp
import numpy as np
from jax.experimental import pallas as pl
from jax.experimental.pallas import tpu as pltpu

H1 = 256
H2 = 256


def _critic_kernel(x_ref, u_ref, w1_ref, b1_ref, w2_ref, b2_ref,
                   w3_ref, b3_ref, o_ref, lhs_ref, *, state_dim):
    S = state_dim

    # ---- Layer 1: fused concat([x, u]) @ W1 -------------------------------
    # Assemble the [tb, S+A] LHS in a VMEM scratch (two masked lane stores),
    # then run a single MXU pass against the resident [S+A, 256] bf16 weight.
    lhs_ref[:, :S] = x_ref[...]
    lhs_ref[:, S:] = u_ref[...]
    h1 = jnp.dot(lhs_ref[...].astype(jnp.bfloat16), w1_ref[...],
                 preferred_element_type=jnp.float32) + b1_ref[...]
    h1 = jnp.maximum(h1, 0.0)

    # ---- Layer 2: bf16 MXU inputs, f32 accumulation, f32 bias/ReLU ---------
    h2 = jnp.dot(h1.astype(jnp.bfloat16), w2_ref[...],
                 preferred_element_type=jnp.float32) + b2_ref[...]
    h2 = jnp.maximum(h2, 0.0)

    # ---- Layer 3: N=1 output -> VPU multiply + XLU lane reduction ----------
    # (avoids a degenerate N=1 MXU pass); b3 is a scalar read from SMEM.
    q = jnp.sum(h2 * w3_ref[...], axis=-1, keepdims=True) + b3_ref[0]
    o_ref[...] = q.astype(o_ref.dtype)


def _round_up(x, m):
    return ((x + m - 1) // m) * m


def critic_forward(x, u, params, *, max_block_b=2048):
    """x: [B, state_dim], u: [B, action_dim] -> q: [B, 1] (f32)."""
    w1, b1, w2, b2, w3, b3 = params
    B, S = x.shape
    A = u.shape[1]
    assert w1.shape == (S + A, H1)

    # Batch tile selection:
    #  * large tiles amortize the ~600-cycle per-grid-step pipeline overhead;
    #  * for B > 8 aim for >= 2 grid steps so v7x shards the "parallel" axis
    #    across both TensorCores;
    #  * cap at max_block_b -- at tb=2048 the double-buffered lane-padded
    #    input/output tiles + activations stay well under the 32 MiB scoped
    #    VMEM limit on every generation (v5e/v6e/v7x).
    if B <= 8:
        tb = B
    else:
        tb = min(max_block_b, _round_up(pl.cdiv(B, 2), 8))
    grid = (pl.cdiv(B, tb),)   # partial final block handled by Pallas
                               # (no wrapper-side jnp.pad HBM copy)

    row_spec = lambda shp: pl.BlockSpec(shp, lambda i: (i, 0))   # batch-tiled
    res_spec = lambda shp: pl.BlockSpec(shp, lambda i: (0, 0))   # VMEM-resident

    flops = 2 * B * ((S + A) * H1 + H1 * H2 + H2)
    bytes_accessed = (B * (S + A + 1) * 4                 # x, u, q
                      + (S + A) * H1 * 2 + H1 * H2 * 2    # bf16 weights
                      + (H1 + H2 + H2 + 1) * 4)           # b1, b2, w3, b3

    kernel = functools.partial(_critic_kernel, state_dim=S)

    out = pl.pallas_call(
        kernel,
        out_shape=jax.ShapeDtypeStruct((B, 1), jnp.float32),
        grid=grid,
        in_specs=[
            row_spec((tb, S)),                                  # x
            row_spec((tb, A)),                                  # u
            res_spec((S + A, H1)),                              # w1 (bf16)
            res_spec((1, H1)),                                  # b1
            res_spec((H1, H2)),                                 # w2 (bf16)
            res_spec((1, H2)),                                  # b2
            res_spec((1, H2)),                                  # w3 (transposed)
            pl.BlockSpec(memory_space=pltpu.MemorySpace.SMEM),  # b3 scalar
        ],
        out_specs=row_spec((tb, 1)),
        scratch_shapes=[pltpu.VMEM((tb, S + A), jnp.float32)],  # fused-L1 LHS
        compiler_params=pltpu.CompilerParams(
            dimension_semantics=("parallel",),
            vmem_limit_bytes=32 * 1024 * 1024),
        cost_estimate=pl.CostEstimate(flops=flops, transcendentals=0,
                                      bytes_accessed=bytes_accessed),
    )(x, u, w1, b1, w2, b2, w3, b3)

    return out


def init_params(key, state_dim, action_dim):
    """Mimics nn.Linear default init U(-1/sqrt(fan_in), +1/sqrt(fan_in)).

    Layout (kernel-friendly):
      w1: [state_dim+action_dim, 256]  bf16   (PyTorch l1.weight.T)
      b1: [1, 256]                     f32
      w2: [256, 256]                   bf16   (l2.weight.T)
      b2: [1, 256]                     f32
      w3: [1, 256]                     f32    (l3.weight, used via VPU reduce)
      b3: [1]                          f32    (SMEM scalar)
    """
    S, A = state_dim, action_dim
    kw1, kb1, kw2, kb2, kw3, kb3 = jax.random.split(key, 6)

    bound1 = 1.0 / np.sqrt(S + A)
    w1 = jax.random.uniform(kw1, (S + A, H1), jnp.float32, -bound1, bound1)
    b1 = jax.random.uniform(kb1, (1, H1), jnp.float32, -bound1, bound1)

    bound2 = 1.0 / np.sqrt(H1)
    w2 = jax.random.uniform(kw2, (H1, H2), jnp.float32, -bound2, bound2)
    b2 = jax.random.uniform(kb2, (1, H2), jnp.float32, -bound2, bound2)

    bound3 = 1.0 / np.sqrt(H2)
    w3 = jax.random.uniform(kw3, (1, H2), jnp.float32, -bound3, bound3)
    b3 = jax.random.uniform(kb3, (1,), jnp.float32, -bound3, bound3)

    return (w1.astype(jnp.bfloat16), b1,
            w2.astype(jnp.bfloat16), b2,
            w3, b3)


def critic_ref(x, u, params):
    """Pure-JAX reference using the same bf16-weight / f32-accumulate recipe."""
    w1, b1, w2, b2, w3, b3 = params
    h = jnp.concatenate([x, u], axis=1).astype(jnp.bfloat16)
    h1 = jnp.maximum(
        jnp.dot(h, w1, preferred_element_type=jnp.float32) + b1, 0.0)
    h2 = jnp.maximum(
        jnp.dot(h1.astype(jnp.bfloat16), w2,
                preferred_element_type=jnp.float32) + b2, 0.0)
    return jnp.sum(h2 * w3, axis=-1, keepdims=True) + b3[0]


if __name__ == "__main__":
    state_dim, action_dim = 16, 8
    key = jax.random.PRNGKey(0)
    kx, ku, kp = jax.random.split(key, 3)
    params = init_params(kp, state_dim, action_dim)

    # Small-batch check (single tile).
    batch = 8
    x = jax.random.normal(kx, (batch, state_dim), jnp.float32)
    u = jax.random.normal(ku, (batch, action_dim), jnp.float32)
    out = jax.block_until_ready(critic_forward(x, u, params))
    assert out.shape == (batch, 1)
    np.testing.assert_allclose(np.asarray(out),
                               np.asarray(critic_ref(x, u, params)),
                               rtol=1e-4, atol=1e-4)

    # Multi-tile check exercising the grid split and a partial final block.
    batch2 = 300
    x2 = jax.random.normal(kx, (batch2, state_dim), jnp.float32)
    u2 = jax.random.normal(ku, (batch2, action_dim), jnp.float32)
    out2 = jax.block_until_ready(critic_forward(x2, u2, params))
    assert out2.shape == (batch2, 1)
    np.testing.assert_allclose(np.asarray(out2),
                               np.asarray(critic_ref(x2, u2, params)),
                               rtol=1e-4, atol=1e-4)

    print("KERNEL_OK")
</pallas_src>

<mosaic_0001>
module attributes {stable_mosaic.version = 11 : i64} {
  func.func @_critic_kernel(%arg0: i32, %arg1: memref<8x16xf32, #tpu.memory_space<vmem>>, %arg2: memref<8x8xf32, #tpu.memory_space<vmem>>, %arg3: memref<24x256xbf16, #tpu.memory_space<vmem>>, %arg4: memref<1x256xf32, #tpu.memory_space<vmem>>, %arg5: memref<256x256xbf16, #tpu.memory_space<vmem>>, %arg6: memref<1x256xf32, #tpu.memory_space<vmem>>, %arg7: memref<1x256xf32, #tpu.memory_space<vmem>>, %arg8: memref<1xf32, #tpu.memory_space<smem>>, %arg9: memref<8x1xf32, #tpu.memory_space<vmem>>, %arg10: memref<8x24xf32, #tpu.memory_space<vmem>>) attributes {dimension_semantics = [#tpu.dimension_semantics<parallel>], iteration_bounds = array<i64: 1>, scalar_prefetch = 0 : i64, scratch_operands = 1 : i64, tpu.core_type = #tpu.core_type<tc>, window_params = [{transform_indices = @transform_0, window_bounds = array<i64: 8, 16>}, {transform_indices = @transform_1, window_bounds = array<i64: 8, 8>}, {pipeline_mode = #tpu.pipeline_mode<synchronous>, transform_indices = @transform_2, window_bounds = array<i64: 24, 256>}, {pipeline_mode = #tpu.pipeline_mode<synchronous>, transform_indices = @transform_3, window_bounds = array<i64: 1, 256>}, {pipeline_mode = #tpu.pipeline_mode<synchronous>, transform_indices = @transform_4, window_bounds = array<i64: 256, 256>}, {pipeline_mode = #tpu.pipeline_mode<synchronous>, transform_indices = @transform_5, window_bounds = array<i64: 1, 256>}, {pipeline_mode = #tpu.pipeline_mode<synchronous>, transform_indices = @transform_6, window_bounds = array<i64: 1, 256>}, {transform_indices = @transform_7, window_bounds = array<i64: 1>}, {transform_indices = @transform_8, window_bounds = array<i64: 8, 1>}]} {
    %c0 = arith.constant 0 : index
    %c0_0 = arith.constant 0 : index
    %0 = vector.load %arg1[%c0, %c0_0] : memref<8x16xf32, #tpu.memory_space<vmem>>, vector<8x16xf32>
    %c0_1 = arith.constant 0 : index
    %c0_2 = arith.constant 0 : index
    %1 = vector.load %arg10[%c0_1, %c0_2] : memref<8x24xf32, #tpu.memory_space<vmem>>, vector<8x16xf32>
    tpu.vector_store %arg10[%c0_1, %c0_2], %0 {strides = array<i32>} : memref<8x24xf32, #tpu.memory_space<vmem>>, vector<8x16xf32>,
    %c0_3 = arith.constant 0 : index
    %c0_4 = arith.constant 0 : index
    %2 = vector.load %arg2[%c0_3, %c0_4] : memref<8x8xf32, #tpu.memory_space<vmem>>, vector<8x8xf32>
    %c0_5 = arith.constant 0 : index
    %c16 = arith.constant 16 : index
    %3 = vector.load %arg10[%c0_5, %c16] : memref<8x24xf32, #tpu.memory_space<vmem>>, vector<8x8xf32>
    tpu.vector_store %arg10[%c0_5, %c16], %2 {strides = array<i32>} : memref<8x24xf32, #tpu.memory_space<vmem>>, vector<8x8xf32>,
    %c0_6 = arith.constant 0 : index
    %c0_7 = arith.constant 0 : index
    %4 = vector.load %arg10[%c0_6, %c0_7] : memref<8x24xf32, #tpu.memory_space<vmem>>, vector<8x24xf32>
    %5 = arith.truncf %4 : vector<8x24xf32> to vector<8x24xbf16>
    %c0_8 = arith.constant 0 : index
    %c0_9 = arith.constant 0 : index
    %6 = vector.load %arg3[%c0_8, %c0_9] : memref<24x256xbf16, #tpu.memory_space<vmem>>, vector<24x256xbf16>
    %cst = arith.constant dense<0.000000e+00> : vector<8x256xf32>
    %7 = tpu.matmul %5, %6, %cst {dimension_numbers = #tpu.dot_dimension_numbers<[1], [0], [0], [1], [0, 0, 1, 1], [], []>} : vector<8x24xbf16>, vector<24x256xbf16>, vector<8x256xf32> -> vector<8x256xf32>
    %c0_10 = arith.constant 0 : index
    %c0_11 = arith.constant 0 : index
    %8 = vector.load %arg4[%c0_10, %c0_11] : memref<1x256xf32, #tpu.memory_space<vmem>>, vector<1x256xf32>
    %9 = vector.broadcast %8 : vector<1x256xf32> to vector<8x256xf32>
    %10 = arith.addf %7, %9 : vector<8x256xf32>
    %cst_12 = arith.constant 0.000000e+00 : f32
    %11 = vector.broadcast %cst_12 : f32 to vector<8x256xf32>
    %12 = arith.maximumf %10, %11 : vector<8x256xf32>
    %13 = arith.truncf %12 : vector<8x256xf32> to vector<8x256xbf16>
    %c0_13 = arith.constant 0 : index
    %c0_14 = arith.constant 0 : index
    %14 = vector.load %arg5[%c0_13, %c0_14] : memref<256x256xbf16, #tpu.memory_space<vmem>>, vector<256x256xbf16>
    %cst_15 = arith.constant dense<0.000000e+00> : vector<8x256xf32>
    %15 = tpu.matmul %13, %14, %cst_15 {dimension_numbers = #tpu.dot_dimension_numbers<[1], [0], [0], [1], [0, 0, 1, 1], [], []>} : vector<8x256xbf16>, vector<256x256xbf16>, vector<8x256xf32> -> vector<8x256xf32>
    %c0_16 = arith.constant 0 : index
    %c0_17 = arith.constant 0 : index
    %16 = vector.load %arg6[%c0_16, %c0_17] : memref<1x256xf32, #tpu.memory_space<vmem>>, vector<1x256xf32>
    %17 = vector.broadcast %16 : vector<1x256xf32> to vector<8x256xf32>
    %18 = arith.addf %15, %17 : vector<8x256xf32>
    %cst_18 = arith.constant 0.000000e+00 : f32
    %19 = vector.broadcast %cst_18 : f32 to vector<8x256xf32>
    %20 = arith.maximumf %18, %19 : vector<8x256xf32>
    %c0_19 = arith.constant 0 : index
    %c0_20 = arith.constant 0 : index
    %21 = vector.load %arg7[%c0_19, %c0_20] : memref<1x256xf32, #tpu.memory_space<vmem>>, vector<1x256xf32>
    %22 = vector.broadcast %21 : vector<1x256xf32> to vector<8x256xf32>
    %23 = arith.mulf %20, %22 : vector<8x256xf32>
    %cst_21 = arith.constant dense<0.000000e+00> : vector<8xf32>
    %24 = vector.multi_reduction <add>, %23, %cst_21 [1] : vector<8x256xf32> to vector<8xf32>
    %25 = vector.shape_cast %24 : vector<8xf32> to vector<8x1xf32>
    %c0_22 = arith.constant 0 : index
    %26 = memref.load %arg8[%c0_22] : memref<1xf32, #tpu.memory_space<smem>>
    %27 = vector.broadcast %26 : f32 to vector<8x1xf32>
    %28 = arith.addf %25, %27 : vector<8x1xf32>
    %c0_23 = arith.constant 0 : index
    %c0_24 = arith.constant 0 : index
    %29 = vector.load %arg9[%c0_23, %c0_24] : memref<8x1xf32, #tpu.memory_space<vmem>>, vector<8x1xf32>
    tpu.vector_store %arg9[%c0_23, %c0_24], %28 {strides = array<i32>} : memref<8x1xf32, #tpu.memory_space<vmem>>, vector<8x1xf32>,
    return
  }
  func.func @transform_0(%arg0: i32) -> (i32, i32) {
    %c0_i32 = arith.constant 0 : i32
    %c0_i32_0 = arith.constant 0 : i32
    return %arg0, %c0_i32 : i32, i32
  }
  func.func @transform_1(%arg0: i32) -> (i32, i32) {
    %c0_i32 = arith.constant 0 : i32
    %c0_i32_0 = arith.constant 0 : i32
    return %arg0, %c0_i32 : i32, i32
  }
  func.func @transform_2(%arg0: i32) -> (i32, i32) {
    %c0_i32 = arith.constant 0 : i32
    %c0_i32_0 = arith.constant 0 : i32
    %c0_i32_1 = arith.constant 0 : i32
    return %c0_i32, %c0_i32_0 : i32, i32
  }
  func.func @transform_3(%arg0: i32) -> (i32, i32) {
    %c0_i32 = arith.constant 0 : i32
    %c0_i32_0 = arith.constant 0 : i32
    %c0_i32_1 = arith.constant 0 : i32
    return %c0_i32, %c0_i32_0 : i32, i32
  }
  func.func @transform_4(%arg0: i32) -> (i32, i32) {
    %c0_i32 = arith.constant 0 : i32
    %c0_i32_0 = arith.constant 0 : i32
    %c0_i32_1 = arith.constant 0 : i32
    return %c0_i32, %c0_i32_0 : i32, i32
  }
  func.func @transform_5(%arg0: i32) -> (i32, i32) {
    %c0_i32 = arith.constant 0 : i32
    %c0_i32_0 = arith.constant 0 : i32
    %c0_i32_1 = arith.constant 0 : i32
    return %c0_i32, %c0_i32_0 : i32, i32
  }
  func.func @transform_6(%arg0: i32) -> (i32, i32) {
    %c0_i32 = arith.constant 0 : i32
    %c0_i32_0 = arith.constant 0 : i32
    %c0_i32_1 = arith.constant 0 : i32
    return %c0_i32, %c0_i32_0 : i32, i32
  }
  func.func @transform_7(%arg0: i32) -> i32 {
    %c0_i32 = arith.constant 0 : i32
    %c0_i32_0 = arith.constant 0 : i32
    return %c0_i32 : i32
  }
  func.func @transform_8(%arg0: i32) -> (i32, i32) {
    %c0_i32 = arith.constant 0 : i32
    %c0_i32_0 = arith.constant 0 : i32
    return %arg0, %c0_i32 : i32, i32
  }
}

</mosaic_0001>

<bundles_post_ra>
// kernel: tpu_custom_call.1
= control target key start
LH: loop header
LB: loop body
LE: loop exit
PB: predicated region body
PF: predicated region fallthrough
CT: control target
= control target key end

     0   :  { %14 = vsyncpa [#allocation5], 0  ;;  %s802_s0 = inlined_call_operand.hbm [shape: f32[8,16], index: 0, kind: input, shape index: {}]   ;;  %s803_s1 = inlined_call_operand.hbm [shape: f32[8,8], index: 1, kind: input, shape index: {}]   ;;  %s804_s2 = inlined_call_operand.hbm [shape: bf16[24,256], index: 2, kind: input, shape index: {}]   ;;  %s805_s3 = inlined_call_operand.vmem [shape: f32[1,256], index: 3, kind: input, shape index: {}]   ;;  %s806_s4 = inlined_call_operand.hbm [shape: bf16[256,256], index: 4, kind: input, shape index: {}]   ;;  %s807_s5 = inlined_call_operand.vmem [shape: f32[1,256], index: 5, kind: input, shape index: {}]   ;;  %s808_s6 = inlined_call_operand.vmem [shape: f32[1,256], index: 6, kind: input, shape index: {}]   ;;  %s809_s7 = inlined_call_operand.<no memory space> [shape: f32[1], index: 7, kind: input, shape index: {}]   ;;  %s810_s8 = inlined_call_operand.vmem [shape: f32[8,1], index: 8, kind: output, shape index: {}]  }
   0x1   :  { %15 = vsyncpa [#allocation7], 0  ;;  %s33_s29 = sshll.u32 %s803_s1, 4  ;;  %s34_s29 = int_to_ptr.hbm [resolvable:$true] %s33_s29 }
   0x2   :  { %16 = vsyncpa [#allocation10], 0  ;;  %s723_s30 = smov [#allocation6]   ;;  %s22_s12 = sshll.u32 %s802_s0, 4  ;;  %s23_s12 = int_to_ptr.hbm [resolvable:$true] %s22_s12 }
   0x3   :  { %s35_s9 = sshll.u32 %s723_s30, 4  ;;  %s724_s13 = smov [#allocation4]   ;;  %s36_s9 = int_to_ptr.vmem [resolvable:$true] %s35_s9 }
   0x4   :  { %38 = dma.hbm_to_vmem [thread:$0]  %s34_s29, 128, %s36_s9, [#allocation7]  }
   0x5   :  { %s24_s14 = sshll.u32 %s724_s13, 4  ;;  %s43_s17 = sshll.u32 %s804_s2, 4  ;;  %s25_s14 = int_to_ptr.vmem [resolvable:$true] %s24_s14  ;;  %s44_s17 = int_to_ptr.hbm [resolvable:$true] %s43_s17 }
   0x6   :  { %27 = dma.hbm_to_vmem [thread:$0]  %s23_s12, 128, %s25_s14, [#allocation5]  }
   0x7   :  { %s725_s1 = smov [#allocation8]   ;;  %s58_s21 = sshll.u32 %s806_s4, 4  ;;  %s59_s21 = int_to_ptr.hbm [resolvable:$true] %s58_s21 }
   0x8   :  { %s45_s18 = sshll.u32 %s725_s1, 4  ;;  %s726_s22 = smov 128   ;;  %s46_s18 = int_to_ptr.vmem [resolvable:$true] %s45_s18 }
   0x9   :  { %s727_s0 = smov 8   ;;  %s728_s23 = smov [#allocation9]  }
   0xa   :  { %51 = dma.hbm_to_vmem [thread:$0]  %s44_s17, 384, %s46_s18, [#allocation7], %s726_s22, %s726_s22, %s727_s0  }
   0xb   :  { %s60_s24 = sshll.u32 %s728_s23, 4  ;;  %s61_s24 = int_to_ptr.vmem [resolvable:$true] %s60_s24 }
   0xc   :  { %66 = dma.hbm_to_vmem [thread:$0]  %s59_s21, 4096, %s61_s24, [#allocation10], %s726_s22, %s726_s22, %s727_s0  }
   0xd   :  { %717 = dma.done.wait [#allocation5], 128  }
   0xe   :  { %718 = vsyncadd [#allocation5], 4294967168 }
   0xf   :  { %719 = dma.done.wait [#allocation7], 512  }
  0x10   :  { %720 = vsyncadd [#allocation7], 4294966784 }
  0x11   :  { %721 = dma.done.wait [#allocation10], 4096  }
  0x12   :  { %722 = vsyncadd [#allocation10], 4294963200  ;;  %v93_v0 = vld [vmem:[#allocation6] sm:$0xff]  ;;  %s729_s2 = smov 16   ;;  %vm91_vm0 = vcmask 130048   ;;  %v104_v1 = vld [vmem:[#allocation8 + $0x10] sm:$0xff] }
  0x13   :  { %95 = vrot.lane.b32.xlu0 %v93_v0, %s729_s2  ;;  %v90_v2 = vld [vmem:[#allocation4] sm:$0xff]  ;;  %v118_v3 = vunpack.c.l.b16 %v104_v1  ;;  %v119_v4 = vunpack.c.h.b16 %v104_v1  ;;  %vm130_vm1 = vcmask 1043456   ;;  %v444_v7 = vld [vmem:[#allocation8] sm:$0xf]  ;;  %v581_v8 = vld [vmem:[#allocation8 + $0x4] sm:$0xf0] }
  0x14   :  { %92 = vst.msk [vmem:[#allocation2] sm:$0xff] %vm91_vm0, %v90_v2  ;;  %v580_v9 = vld [vmem:[#allocation8 + $0x4] sm:$0xf]  ;;  %v446_v10 = vld [vmem:[#allocation8 + $0x8] sm:$0xf0]  ;;  %v445_v13 = vor.u32 %v581_v8, %v444_v7  ;;  %vm98_vm2 = vcmask 195712  }
  0x15   :  { %v122_v5 = vpack.c.b16 %v118_v3, %v118_v3  ;;  %v123_v6 = vpack.c.b16 %v119_v4, %v119_v4  ;;  %v449_v14 = vor.u32 %v580_v9, %v446_v10  ;;  %v510_v15 = vld [vmem:[#allocation9 + $0x70] sm:$0xf]  ;;  %v597_v16 = vld [vmem:[#allocation9 + $0x74] sm:$0xf0]  ;;  %v596_v20 = vld [vmem:[#allocation9 + $0x74] sm:$0xf] }
  0x16   :  { %v574_v17 = vld [vmem:[#allocation9 + $0xf0] sm:$0xf]  ;;  %v511_v18 = vor.u32 %v597_v16, %v510_v15  ;;  %v613_v19 = vld [vmem:[#allocation9 + $0xf4] sm:$0xf0]  ;;  %v512_v21 = vld [vmem:[#allocation9 + $0x78] sm:$0xf0] }
  0x17   :  { %v132_v11 = vsel %vm130_vm1, %v122_v5, 0  ;;  %v135_v12 = vsel %vm130_vm1, %v123_v6, 0  ;;  %v575_v22 = vor.u32 %v613_v19, %v574_v17  ;;  %v515_v23 = vor.u32 %v596_v20, %v512_v21  ;;  %v612_v24 = vld [vmem:[#allocation9 + $0xf4] sm:$0xf]  ;;  %v576_v25 = vld [vmem:[#allocation9 + $0xf8] sm:$0xf0] }
  0x18   :  { %143 = vmatpush.bf16.msra.mxu0 %v132_v11  ;;  %156 = vmatpush.bf16.msra.mxu1 %v135_v12  ;;  %v502_v26 = vld [vmem:[#allocation9 + $0x60] sm:$0xf]  ;;  %v579_v27 = vor.u32 %v612_v24, %v576_v25  ;;  %v595_v28 = vld [vmem:[#allocation9 + $0x64] sm:$0xf0]  ;;  %v594_v33 = vld [vmem:[#allocation9 + $0x64] sm:$0xf] }
  0x19   :  { %365 = vmatpush.bf16.msra.mxu2 %v511_v18  ;;  %v566_v29 = vld [vmem:[#allocation9 + $0xe0] sm:$0xf]  ;;  %v611_v30 = vld [vmem:[#allocation9 + $0xe4] sm:$0xf0]  ;;  %378 = vmatpush.bf16.msra.mxu3 %v575_v22  ;;  %v503_v31 = vor.u32 %v595_v28, %v502_v26  ;;  %v504_v34 = vld [vmem:[#allocation9 + $0x68] sm:$0xf0] }
  0x1a   :  { %v567_v32 = vor.u32 %v611_v30, %v566_v29  ;;  %v610_v35 = vld [vmem:[#allocation9 + $0xe4] sm:$0xf]  ;;  %v507_v36 = vor.u32 %v594_v33, %v504_v34  ;;  %v568_v37 = vld [vmem:[#allocation9 + $0xe8] sm:$0xf0]  ;;  %v494_v38 = vld [vmem:[#allocation9 + $0x50] sm:$0xf] }
  0x1b   :  { %v593_v39 = vld [vmem:[#allocation9 + $0x54] sm:$0xf0]  ;;  %v571_v40 = vor.u32 %v610_v35, %v568_v37  ;;  %v558_v41 = vld [vmem:[#allocation9 + $0xd0] sm:$0xf]  ;;  %v592_v43 = vld [vmem:[#allocation9 + $0x54] sm:$0xf] }
  0x1c   :  { %144 = vmatpush.bf16.msra.mxu0 %v445_v13  ;;  %157 = vmatpush.bf16.msra.mxu1 %v449_v14  ;;  %v609_v42 = vld [vmem:[#allocation9 + $0xd4] sm:$0xf0]  ;;  %v495_v44 = vor.u32 %v593_v39, %v494_v38  ;;  %v496_v45 = vld [vmem:[#allocation9 + $0x58] sm:$0xf0]  ;;  %v608_v46 = vld [vmem:[#allocation9 + $0xd4] sm:$0xf] }
  0x1d   :  { %366 = vmatpush.bf16.msra.mxu2 %v503_v31  ;;  %v560_v47 = vld [vmem:[#allocation9 + $0xd8] sm:$0xf0]  ;;  %379 = vmatpush.bf16.msra.mxu3 %v567_v32  ;;  %v559_v48 = vor.u32 %v609_v42, %v558_v41  ;;  %v499_v49 = vor.u32 %v592_v43, %v496_v45  ;;  %v486_v50 = vld [vmem:[#allocation9 + $0x40] sm:$0xf]  ;;  %v591_v51 = vld [vmem:[#allocation9 + $0x44] sm:$0xf0] }
  0x1e   :  { %v550_v52 = vld [vmem:[#allocation9 + $0xc0] sm:$0xf]  ;;  %v563_v53 = vor.u32 %v608_v46, %v560_v47  ;;  %v607_v54 = vld [vmem:[#allocation9 + $0xc4] sm:$0xf0]  ;;  %v590_v55 = vld [vmem:[#allocation9 + $0x44] sm:$0xf]  ;;  %v487_v59 = vor.u32 %v591_v51, %v486_v50 }
  0x1f   :  { %v488_v56 = vld [vmem:[#allocation9 + $0x48] sm:$0xf0]  ;;  %v606_v57 = vld [vmem:[#allocation9 + $0xc4] sm:$0xf]  ;;  %v551_v60 = vor.u32 %v607_v54, %v550_v52  ;;  %v478_v62 = vld [vmem:[#allocation9 + $0x30] sm:$0xf] }
  0x20   :  { %391 = vmatpush.bf16.msrb.mxu0 %v515_v23  ;;  %404 = vmatpush.bf16.msrb.mxu1 %v579_v27  ;;  %v552_v58 = vld [vmem:[#allocation9 + $0xc8] sm:$0xf0]  ;;  %v491_v61 = vor.u32 %v590_v55, %v488_v56  ;;  %v589_v63 = vld [vmem:[#allocation9 + $0x34] sm:$0xf0]  ;;  %v542_v0 = vld [vmem:[#allocation9 + $0xb0] sm:$0xf] }
  0x21   :  { %367 = vmatpush.bf16.msra.mxu2 %v495_v44  ;;  %380 = vmatpush.bf16.msra.mxu3 %v559_v48  ;;  %v555_v1 = vor.u32 %v606_v57, %v552_v58  ;;  %v605_v2 = vld [vmem:[#allocation9 + $0xb4] sm:$0xf0]  ;;  %v588_v3 = vld [vmem:[#allocation9 + $0x34] sm:$0xf]  ;;  %v480_v4 = vld [vmem:[#allocation9 + $0x38] sm:$0xf0]  ;;  %v479_v7 = vor.u32 %v589_v63, %v478_v62 }
  0x22   :  { %v604_v5 = vld [vmem:[#allocation9 + $0xb4] sm:$0xf]  ;;  %v544_v6 = vld [vmem:[#allocation9 + $0xb8] sm:$0xf0]  ;;  %v543_v8 = vor.u32 %v605_v2, %v542_v0  ;;  %v483_v9 = vor.u32 %v588_v3, %v480_v4  ;;  %v470_v10 = vld [vmem:[#allocation9 + $0x20] sm:$0xf] }
  0x23   :  { %v587_v11 = vld [vmem:[#allocation9 + $0x24] sm:$0xf0]  ;;  %v534_v12 = vld [vmem:[#allocation9 + $0xa0] sm:$0xf]  ;;  %v547_v13 = vor.u32 %v604_v5, %v544_v6  ;;  %v586_v15 = vld [vmem:[#allocation9 + $0x24] sm:$0xf] }
  0x24   :  { %392 = vmatpush.bf16.msrb.mxu0 %v507_v36  ;;  %405 = vmatpush.bf16.msrb.mxu1 %v571_v40  ;;  %v603_v14 = vld [vmem:[#allocation9 + $0xa4] sm:$0xf0]  ;;  %v472_v16 = vld [vmem:[#allocation9 + $0x28] sm:$0xf0]  ;;  %v602_v17 = vld [vmem:[#allocation9 + $0xa4] sm:$0xf]  ;;  %v471_v19 = vor.u32 %v587_v11, %v470_v10 }
  0x25   :  { %368 = vmatpush.bf16.msra.mxu2 %v487_v59  ;;  %381 = vmatpush.bf16.msra.mxu3 %v551_v60  ;;  %v536_v18 = vld [vmem:[#allocation9 + $0xa8] sm:$0xf0]  ;;  %v535_v20 = vor.u32 %v603_v14, %v534_v12  ;;  %v475_v21 = vor.u32 %v586_v15, %v472_v16  ;;  %vm126_vm3 = vcmask 195584   ;;  %v462_v26 = vld [vmem:[#allocation9 + $0x10] sm:$0xf]  ;;  %vm433_vm4 = vcmask 7168  }
  0x26   :  { %v539_v23 = vor.u32 %v602_v17, %v536_v18  ;;  %v585_v27 = vld [vmem:[#allocation9 + $0x14] sm:$0xf0]  ;;  %v526_v28 = vld [vmem:[#allocation9 + $0x90] sm:$0xf]  ;;  %v584_v31 = vld [vmem:[#allocation9 + $0x14] sm:$0xf] }
  0x27   :  { %v463_v29 = vor.u32 %v585_v27, %v462_v26  ;;  %v601_v30 = vld [vmem:[#allocation9 + $0x94] sm:$0xf0]  ;;  %v464_v32 = vld [vmem:[#allocation9 + $0x18] sm:$0xf0]  ;;  %v600_v35 = vld [vmem:[#allocation9 + $0x94] sm:$0xf] }
  0x28   :  { %393 = vmatpush.bf16.msrb.mxu0 %v499_v49  ;;  %406 = vmatpush.bf16.msrb.mxu1 %v563_v53  ;;  %v527_v33 = vor.u32 %v601_v30, %v526_v28  ;;  %v467_v34 = vor.u32 %v584_v31, %v464_v32  ;;  %v528_v36 = vld [vmem:[#allocation9 + $0x98] sm:$0xf0]  ;;  %v454_v38 = vld [vmem:[#allocation9] sm:$0xf]  ;;  %v583_v39 = vld [vmem:[#allocation9 + $0x4] sm:$0xf0] }
  0x29   :  { %369 = vmatpush.bf16.msra.mxu2 %v479_v7  ;;  %382 = vmatpush.bf16.msra.mxu3 %v543_v8  ;;  %v531_v37 = vor.u32 %v600_v35, %v528_v36  ;;  %v518_v40 = vld [vmem:[#allocation9 + $0x80] sm:$0xf]  ;;  %v455_v41 = vor.u32 %v583_v39, %v454_v38  ;;  %v599_v42 = vld [vmem:[#allocation9 + $0x84] sm:$0xf0]  ;;  %v582_v43 = vld [vmem:[#allocation9 + $0x4] sm:$0xf] }
  0x2a   :  { %v456_v44 = vld [vmem:[#allocation9 + $0x8] sm:$0xf0]  ;;  %v519_v45 = vor.u32 %v599_v42, %v518_v40  ;;  %v598_v47 = vld [vmem:[#allocation9 + $0x84] sm:$0xf]  ;;  %v105_v50 = vld [vmem:[%s805_s3] sm:$0x3] }
  0x2b   :  { %v459_v46 = vor.u32 %v582_v43, %v456_v44  ;;  %v520_v48 = vld [vmem:[#allocation9 + $0x88] sm:$0xf0]  ;;  %v107_v51 = vperm.slane %v105_v50, 0  ;;  %v108_v52 = vperm.slane %v105_v50, 1  ;;  %v199_v63 = vld [vmem:[%s807_s5] sm:$0x3] }
  0x2c   :  { %394 = vmatpush.bf16.msrb.mxu0 %v491_v61  ;;  %407 = vmatpush.bf16.msrb.mxu1 %v555_v1  ;;  %v523_v49 = vor.u32 %v598_v47, %v520_v48  ;;  %v202_v0 = vperm.slane %v199_v63, 1  ;;  %v201_v4 = vperm.slane %v199_v63, 0  ;;  %v419_v6 = vld [vmem:[%s808_s6] sm:$0x3] }
  0x2d   :  { %370 = vmatpush.bf16.msra.mxu2 %v471_v19  ;;  %383 = vmatpush.bf16.msra.mxu3 %v535_v20  ;;  %v422_v11 = vperm.slane %v419_v6, 1 }
  0x30   :  { %395 = vmatpush.bf16.msrb.mxu0 %v483_v9  ;;  %408 = vmatpush.bf16.msrb.mxu1 %v547_v13  ;;  %v421_v13 = vperm.slane %v419_v6, 0 }
  0x31   :  { %371 = vmatpush.bf16.msra.mxu2 %v463_v29  ;;  %384 = vmatpush.bf16.msra.mxu3 %v527_v33 }
  0x34   :  { %396 = vmatpush.bf16.msrb.mxu0 %v475_v21  ;;  %409 = vmatpush.bf16.msrb.mxu1 %v539_v23 }
  0x35   :  { %372 = vmatpush.bf16.msra.mxu2 %v455_v41  ;;  %385 = vmatpush.bf16.msra.mxu3 %v519_v45 }
  0x38   :  { %397 = vmatpush.bf16.msrb.mxu0 %v467_v34  ;;  %410 = vmatpush.bf16.msrb.mxu1 %v531_v37 }
  0x3c   :  { %398 = vmatpush.bf16.msrb.mxu0 %v459_v46  ;;  %411 = vmatpush.bf16.msrb.mxu1 %v523_v49 }
  0x85   :  { %v96_v22 = vpop.permute.xlu0 %95 }
  0x86   :  { %99 = vst.msk [vmem:[#allocation2] sm:$0xff] %vm98_vm2, %v96_v22  ;;  %v431_v22 = vstv %s809_s7 }
  0x8d   :  { %v100_v24 = vld [vmem:[#allocation2] sm:$0xff] }
  0x8e   :  { %v101_v25 = vpack.c.bf16 %v100_v24, %v100_v24 }
  0x90   :  { %450 = vmatmul.msk.bf16.vlgmr.msra.gmra.mxu0 %vm126_vm3, %v101_v25  ;;  %451 = vmatmul.msk.bf16.vlgmr.msra.gmra.mxu1 %vm126_vm3, %v101_v25 }
 0x10d   :  { %v146_v53 = vpop.f32.mrf.mxu0  ;;  %v159_v54 = vpop.f32.mrf.mxu1 }
 0x10e   :  { %v147_v55 = vadd.f32 %v146_v53, %v107_v51  ;;  %v160_v56 = vadd.f32 %v159_v54, %v108_v52 }
 0x110   :  { %v163_v57 = vmax.f32 %v147_v55, 0.0  ;;  %v164_v58 = vmax.f32 %v160_v56, 0.0 }
 0x112   :  { %v165_v59 = vpack.c.bf16 %v163_v57, %v163_v57  ;;  %v166_v60 = vpack.c.bf16 %v164_v58, %v164_v58 }
 0x114   :  { %373 = vmatmul.bf16.vlgmr.msra.gmra.mxu2 %v165_v59  ;;  %386 = vmatmul.bf16.vlgmr.msra.gmra.mxu3 %v166_v60 }
 0x115   :  { %399 = vmatmul.bf16.vlgmr.msrb.gmra.mxu0 %v165_v59  ;;  %412 = vmatmul.bf16.vlgmr.msrb.gmra.mxu1 %v166_v60  ;;  %v148_v61 = vpop.f32.mrf.mxu0  ;;  %v161_v62 = vpop.f32.mrf.mxu1 }
 0x192   :  { %v400_v1 = vpop.f32.mrf.mxu0  ;;  %v413_v2 = vpop.f32.mrf.mxu1 }
 0x193   :  { %v401_v3 = vadd.f32 %v400_v1, %v202_v0 }
 0x195   :  { %v414_v5 = vadd.f32 %v413_v2, %v401_v3 }
 0x197   :  { %v374_v7 = vpop.f32.mrf.mxu2  ;;  %v387_v8 = vpop.f32.mrf.mxu3  ;;  %v418_v10 = vmax.f32 %v414_v5, 0.0 }
 0x198   :  { %v375_v9 = vadd.f32 %v374_v7, %v201_v4 }
 0x199   :  { %v426_v17 = vmul.f32 %v422_v11, %v418_v10 }
 0x19a   :  { %v388_v12 = vadd.f32 %v387_v8, %v375_v9  ;;  %v402_v14 = vpop.f32.mrf.mxu0  ;;  %v415_v15 = vpop.f32.mrf.mxu1 }
 0x19c   :  { %v417_v16 = vmax.f32 %v388_v12, 0.0 }
 0x19e   :  { %v425_v18 = vmul.f32 %v421_v13, %v417_v16 }
 0x19f   :  { %v376_v19 = vpop.f32.mrf.mxu2  ;;  %v389_v20 = vpop.f32.mrf.mxu3 }
 0x1a0   :  { %v427_v21 = vadd.f32 %v426_v17, %v425_v18 }
 0x1a2   :  { %428 = vadd.xlane.f32.xlu0 %v427_v21 }
 0x215   :  { %v429_v23 = vpop.xlane.xlu0 %428 }
 0x216   :  { %v432_v24 = vadd.f32 %v431_v22, %v429_v23 }
 0x218   :  { %434 = vst.msk [vmem:[%s810_s8] sm:$0xff] %vm433_vm4, %v432_v24 }
 0x219   :  { %439 = vsyncpa [#allocation5], 1 }
 0x21a   :  { %440 = vsyncpa [#allocation7], 1 }
 0x21b   :  { %441 = vsyncpa [#allocation10], 1 }

</bundles_post_ra>
